<compile_context>
chip_gen: v5e
topology: v5e:2x2
jax: 0.10.0
libtpu: 0.0.40
codegen_flags: <defaults>
</compile_context>

<pallas_src>
import jax
import jax.numpy as jnp
from jax.experimental import pallas as pl
from jax.experimental.pallas import tpu as pltpu

NEG_SLOPE = 0.01   # nn.LeakyReLU() default negative_slope
LANE = 128         # TPU lane width


def _leaky_relu(x):
    return jnp.where(x >= 0, x, NEG_SLOPE * x)


def _round_up(n, m):
    return -(-n // m) * m


def _pad_to(a, shape):
    pads = [(0, t - s) for s, t in zip(a.shape, shape)]
    if any(hi for _, hi in pads):
        a = jnp.pad(a, pads)
    return a


def mlp_kernel(x_ref, w1_ref, b1_ref, w2_ref, b2_ref, w3_ref, b3_ref, o_ref):
    """Fused fc1 -> LeakyReLU -> fc2 -> LeakyReLU -> fc3 on one batch tile.

    Matmuls run on the MXU with f32 accumulation; bias adds + LeakyReLU run in
    f32 on the VPU; intermediates are cast back to the weight dtype (bf16 or
    f32) only to feed the next MXU pass.
    """
    w_dtype = w1_ref.dtype
    h = jnp.dot(x_ref[...], w1_ref[...], preferred_element_type=jnp.float32)
    h = _leaky_relu(h + b1_ref[...])
    h = jnp.dot(h.astype(w_dtype), w2_ref[...], preferred_element_type=jnp.float32)
    h = _leaky_relu(h + b2_ref[...])
    h = jnp.dot(h.astype(w_dtype), w3_ref[...], preferred_element_type=jnp.float32)
    o_ref[...] = (h + b3_ref[...]).astype(o_ref.dtype)


def _choose_bm(batch, block_m):
    """8-aligned batch tile; prefer >=2 grid steps (v7x has 2 TCs/chip)."""
    if batch <= block_m:
        if batch >= 16 and batch % 16 == 0:
            return batch // 2          # two grid steps -> both TensorCores busy
        return batch                   # full-dim block is always legal
    return max(8, (block_m // 8) * 8)


def mlp_forward(x, w1, b1, w2, b2, w3, b3, *, block_m=256, compute_dtype=None):
    """x: (B, D_in). w_i: (in, out) [transposed vs. PyTorch]. b_i: (out,)."""
    out_dtype = x.dtype
    B, D_in = x.shape
    H1, H2, D_out = w1.shape[1], w2.shape[1], w3.shape[1]

    w_dtype = jnp.dtype(w1.dtype) if compute_dtype is None else jnp.dtype(compute_dtype)

    # Pad all feature dims up to 128 lanes: dense MXU tiles + unmasked stores.
    Dp_in, H1p, H2p, Dp_out = (_round_up(d, LANE) for d in (D_in, H1, H2, D_out))

    xp = _pad_to(x, (B, Dp_in)).astype(w_dtype)
    w1p = _pad_to(w1, (Dp_in, H1p)).astype(w_dtype)
    w2p = _pad_to(w2, (H1p, H2p)).astype(w_dtype)
    w3p = _pad_to(w3, (H2p, Dp_out)).astype(w_dtype)
    # Biases stay f32: the bias + LeakyReLU epilogue is always done in f32.
    b1p = _pad_to(b1, (H1p,)).astype(jnp.float32).reshape(1, H1p)
    b2p = _pad_to(b2, (H2p,)).astype(jnp.float32).reshape(1, H2p)
    b3p = _pad_to(b3, (Dp_out,)).astype(jnp.float32).reshape(1, Dp_out)

    bm = _choose_bm(B, block_m)
    grid = (pl.cdiv(B, bm),)

    # --- explicit VMEM budget (weights resident, activations tiled) ---------
    w_itemsize = w_dtype.itemsize
    o_itemsize = jnp.dtype(out_dtype).itemsize
    weight_bytes = (w1p.size + w2p.size + w3p.size) * w_itemsize
    bias_bytes = (b1p.size + b2p.size + b3p.size) * 4
    x_tile_bytes = bm * Dp_in * w_itemsize
    o_tile_bytes = bm * Dp_out * o_itemsize
    live_bytes = bm * (H1p + H2p) * 4              # f32 intermediates between matmuls
    vmem_needed = (weight_bytes + bias_bytes       # single-buffered constants
                   + 2 * (x_tile_bytes + o_tile_bytes)
                   + live_bytes)
    # 2x headroom (covers the double-buffered fallback); cap at 64 MiB (v7x).
    vmem_limit = int(min(max(2 * vmem_needed, 32 * 1024 * 1024), 64 * 1024 * 1024))

    cost = pl.CostEstimate(
        flops=2 * B * (Dp_in * H1p + H1p * H2p + H2p * Dp_out),
        transcendentals=0,
        bytes_accessed=(weight_bytes + bias_bytes
                        + B * Dp_in * w_itemsize + B * Dp_out * o_itemsize),
    )

    def _const_spec(shape, mode):
        if mode is None:
            return pl.BlockSpec(shape, lambda i: (0, 0))
        return pl.BlockSpec(shape, lambda i: (0, 0), pipeline_mode=mode)

    def _build(weight_mode):
        return pl.pallas_call(
            mlp_kernel,
            out_shape=jax.ShapeDtypeStruct((B, Dp_out), out_dtype),
            grid_spec=pltpu.PrefetchScalarGridSpec(
                num_scalar_prefetch=0,
                grid=grid,
                in_specs=[
                    pl.BlockSpec((bm, Dp_in), lambda i: (i, 0)),   # x tile over batch
                    _const_spec((Dp_in, H1p), weight_mode),        # W1 (resident)
                    _const_spec((1, H1p), weight_mode),            # b1
                    _const_spec((H1p, H2p), weight_mode),          # W2
                    _const_spec((1, H2p), weight_mode),            # b2
                    _const_spec((H2p, Dp_out), weight_mode),       # W3
                    _const_spec((1, Dp_out), weight_mode),         # b3
                ],
                out_specs=pl.BlockSpec((bm, Dp_out), lambda i: (i, 0)),
            ),
            compiler_params=pltpu.CompilerParams(
                dimension_semantics=("parallel",),
                vmem_limit_bytes=vmem_limit,
            ),
            cost_estimate=cost,
        )

    args = (xp, w1p, b1p, w2p, b2p, w3p, b3p)
    try:
        # Constant-index operands don't need double buffering: single-buffer
        # them to halve resident-weight VMEM.
        out_padded = _build(pl.Buffered(1))(*args)
    except Exception:
        # Fallback: default double-buffered pipeline if this Pallas build
        # rejects single-buffered BlockSpecs.
        out_padded = _build(None)(*args)

    return out_padded[:, :D_out]


def init_linear_params(key, in_features, out_features, dtype=jnp.float32):
    """nn.Linear-style init (uniform +/- 1/sqrt(fan_in)); weight is (in, out)."""
    kw, kb = jax.random.split(key)
    bound = 1.0 / (in_features ** 0.5)
    w = jax.random.uniform(kw, (in_features, out_features), dtype, -bound, bound)
    b = jax.random.uniform(kb, (out_features,), dtype, -bound, bound)
    return w, b


def mlp_reference(x, w1, b1, w2, b2, w3, b3, compute_dtype=None):
    """Pure-JAX reference mirroring the kernel's precision choices."""
    cd = x.dtype if compute_dtype is None else compute_dtype

    def dense(h, w, b):
        return jnp.dot(h.astype(cd), w.astype(cd),
                       preferred_element_type=jnp.float32) + b.astype(jnp.float32)

    h = _leaky_relu(dense(x, w1, b1))
    h = _leaky_relu(dense(h, w2, b2))
    return dense(h, w3, b3).astype(x.dtype)


if __name__ == "__main__":
    # Small shapes consistent with the module's forward.
    batch = 8
    input_dim, hidden_dim_1, hidden_dim_2, output_dim = 32, 64, 48, 16

    key = jax.random.PRNGKey(0)
    kx, k1, k2, k3 = jax.random.split(key, 4)

    x = jax.random.normal(kx, (batch, input_dim), jnp.float32)
    w1, b1 = init_linear_params(k1, input_dim, hidden_dim_1)
    w2, b2 = init_linear_params(k2, hidden_dim_1, hidden_dim_2)
    w3, b3 = init_linear_params(k3, hidden_dim_2, output_dim)

    # f32 path: exact check against the f32 reference.
    out_f32 = jax.block_until_ready(mlp_forward(x, w1, b1, w2, b2, w3, b3))
    ref_f32 = mlp_reference(x, w1, b1, w2, b2, w3, b3)
    assert out_f32.shape == (batch, output_dim)
    assert jnp.allclose(out_f32, ref_f32, atol=1e-5, rtol=1e-5)

    # bf16 path (MXU-native on v6e/v7x): f32 accumulation, looser tolerance
    # against a reference that uses the same bf16 inputs.
    out_bf16 = jax.block_until_ready(
        mlp_forward(x, w1, b1, w2, b2, w3, b3, compute_dtype=jnp.bfloat16))
    ref_bf16 = mlp_reference(x, w1, b1, w2, b2, w3, b3,
                             compute_dtype=jnp.bfloat16)
    assert out_bf16.shape == (batch, output_dim)
    assert jnp.allclose(out_bf16, ref_bf16, atol=2e-2, rtol=2e-2)

    print("KERNEL_OK")
</pallas_src>

<mosaic_0001>
module attributes {stable_mosaic.version = 11 : i64} {
  func.func @mlp_kernel(%arg0: i32, %arg1: memref<8x128xf32, #tpu.memory_space<vmem>>, %arg2: memref<128x128xf32, #tpu.memory_space<vmem>>, %arg3: memref<1x128xf32, #tpu.memory_space<vmem>>, %arg4: memref<128x128xf32, #tpu.memory_space<vmem>>, %arg5: memref<1x128xf32, #tpu.memory_space<vmem>>, %arg6: memref<128x128xf32, #tpu.memory_space<vmem>>, %arg7: memref<1x128xf32, #tpu.memory_space<vmem>>, %arg8: memref<8x128xf32, #tpu.memory_space<vmem>>) attributes {dimension_semantics = [#tpu.dimension_semantics<parallel>], iteration_bounds = array<i64: 1>, scalar_prefetch = 0 : i64, scratch_operands = 0 : i64, tpu.core_type = #tpu.core_type<tc>, window_params = [{transform_indices = @transform_0, window_bounds = array<i64: 8, 128>}, {pipeline_mode = #tpu.pipeline_mode<synchronous>, transform_indices = @transform_1, window_bounds = array<i64: 128, 128>}, {pipeline_mode = #tpu.pipeline_mode<synchronous>, transform_indices = @transform_2, window_bounds = array<i64: 1, 128>}, {pipeline_mode = #tpu.pipeline_mode<synchronous>, transform_indices = @transform_3, window_bounds = array<i64: 128, 128>}, {pipeline_mode = #tpu.pipeline_mode<synchronous>, transform_indices = @transform_4, window_bounds = array<i64: 1, 128>}, {pipeline_mode = #tpu.pipeline_mode<synchronous>, transform_indices = @transform_5, window_bounds = array<i64: 128, 128>}, {pipeline_mode = #tpu.pipeline_mode<synchronous>, transform_indices = @transform_6, window_bounds = array<i64: 1, 128>}, {transform_indices = @transform_7, window_bounds = array<i64: 8, 128>}]} {
    %c0 = arith.constant 0 : index
    %c0_0 = arith.constant 0 : index
    %0 = vector.load %arg1[%c0, %c0_0] : memref<8x128xf32, #tpu.memory_space<vmem>>, vector<8x128xf32>
    %c0_1 = arith.constant 0 : index
    %c0_2 = arith.constant 0 : index
    %1 = vector.load %arg2[%c0_1, %c0_2] : memref<128x128xf32, #tpu.memory_space<vmem>>, vector<128x128xf32>
    %cst = arith.constant dense<0.000000e+00> : vector<8x128xf32>
    %2 = tpu.matmul %0, %1, %cst {dimension_numbers = #tpu.dot_dimension_numbers<[1], [0], [0], [1], [0, 0, 1, 1], [], []>} : vector<8x128xf32>, vector<128x128xf32>, vector<8x128xf32> -> vector<8x128xf32>
    %c0_3 = arith.constant 0 : index
    %c0_4 = arith.constant 0 : index
    %3 = vector.load %arg3[%c0_3, %c0_4] : memref<1x128xf32, #tpu.memory_space<vmem>>, vector<1x128xf32>
    %4 = vector.broadcast %3 : vector<1x128xf32> to vector<8x128xf32>
    %5 = arith.addf %2, %4 : vector<8x128xf32>
    %cst_5 = arith.constant 0.000000e+00 : f32
    %6 = vector.broadcast %cst_5 : f32 to vector<8x128xf32>
    %7 = arith.cmpf oge, %5, %6 : vector<8x128xf32>
    %cst_6 = arith.constant 0.00999999977 : f32
    %8 = vector.broadcast %cst_6 : f32 to vector<8x128xf32>
    %9 = arith.mulf %8, %5 : vector<8x128xf32>
    %10 = arith.select %7, %5, %9 : vector<8x128xi1>, vector<8x128xf32>
    %c0_7 = arith.constant 0 : index
    %c0_8 = arith.constant 0 : index
    %11 = vector.load %arg4[%c0_7, %c0_8] : memref<128x128xf32, #tpu.memory_space<vmem>>, vector<128x128xf32>
    %cst_9 = arith.constant dense<0.000000e+00> : vector<8x128xf32>
    %12 = tpu.matmul %10, %11, %cst_9 {dimension_numbers = #tpu.dot_dimension_numbers<[1], [0], [0], [1], [0, 0, 1, 1], [], []>} : vector<8x128xf32>, vector<128x128xf32>, vector<8x128xf32> -> vector<8x128xf32>
    %c0_10 = arith.constant 0 : index
    %c0_11 = arith.constant 0 : index
    %13 = vector.load %arg5[%c0_10, %c0_11] : memref<1x128xf32, #tpu.memory_space<vmem>>, vector<1x128xf32>
    %14 = vector.broadcast %13 : vector<1x128xf32> to vector<8x128xf32>
    %15 = arith.addf %12, %14 : vector<8x128xf32>
    %cst_12 = arith.constant 0.000000e+00 : f32
    %16 = vector.broadcast %cst_12 : f32 to vector<8x128xf32>
    %17 = arith.cmpf oge, %15, %16 : vector<8x128xf32>
    %cst_13 = arith.constant 0.00999999977 : f32
    %18 = vector.broadcast %cst_13 : f32 to vector<8x128xf32>
    %19 = arith.mulf %18, %15 : vector<8x128xf32>
    %20 = arith.select %17, %15, %19 : vector<8x128xi1>, vector<8x128xf32>
    %c0_14 = arith.constant 0 : index
    %c0_15 = arith.constant 0 : index
    %21 = vector.load %arg6[%c0_14, %c0_15] : memref<128x128xf32, #tpu.memory_space<vmem>>, vector<128x128xf32>
    %cst_16 = arith.constant dense<0.000000e+00> : vector<8x128xf32>
    %22 = tpu.matmul %20, %21, %cst_16 {dimension_numbers = #tpu.dot_dimension_numbers<[1], [0], [0], [1], [0, 0, 1, 1], [], []>} : vector<8x128xf32>, vector<128x128xf32>, vector<8x128xf32> -> vector<8x128xf32>
    %c0_17 = arith.constant 0 : index
    %c0_18 = arith.constant 0 : index
    %23 = vector.load %arg7[%c0_17, %c0_18] : memref<1x128xf32, #tpu.memory_space<vmem>>, vector<1x128xf32>
    %24 = vector.broadcast %23 : vector<1x128xf32> to vector<8x128xf32>
    %25 = arith.addf %22, %24 : vector<8x128xf32>
    %c0_19 = arith.constant 0 : index
    %c0_20 = arith.constant 0 : index
    %26 = vector.load %arg8[%c0_19, %c0_20] : memref<8x128xf32, #tpu.memory_space<vmem>>, vector<8x128xf32>
    tpu.vector_store %arg8[%c0_19, %c0_20], %25 {strides = array<i32>} : memref<8x128xf32, #tpu.memory_space<vmem>>, vector<8x128xf32>,
    return
  }
  func.func @transform_0(%arg0: i32) -> (i32, i32) {
    %c0_i32 = arith.constant 0 : i32
    %c0_i32_0 = arith.constant 0 : i32
    return %arg0, %c0_i32 : i32, i32
  }
  func.func @transform_1(%arg0: i32) -> (i32, i32) {
    %c0_i32 = arith.constant 0 : i32
    %c0_i32_0 = arith.constant 0 : i32
    %c0_i32_1 = arith.constant 0 : i32
    return %c0_i32, %c0_i32_0 : i32, i32
  }
  func.func @transform_2(%arg0: i32) -> (i32, i32) {
    %c0_i32 = arith.constant 0 : i32
    %c0_i32_0 = arith.constant 0 : i32
    %c0_i32_1 = arith.constant 0 : i32
    return %c0_i32, %c0_i32_0 : i32, i32
  }
  func.func @transform_3(%arg0: i32) -> (i32, i32) {
    %c0_i32 = arith.constant 0 : i32
    %c0_i32_0 = arith.constant 0 : i32
    %c0_i32_1 = arith.constant 0 : i32
    return %c0_i32, %c0_i32_0 : i32, i32
  }
  func.func @transform_4(%arg0: i32) -> (i32, i32) {
    %c0_i32 = arith.constant 0 : i32
    %c0_i32_0 = arith.constant 0 : i32
    %c0_i32_1 = arith.constant 0 : i32
    return %c0_i32, %c0_i32_0 : i32, i32
  }
  func.func @transform_5(%arg0: i32) -> (i32, i32) {
    %c0_i32 = arith.constant 0 : i32
    %c0_i32_0 = arith.constant 0 : i32
    %c0_i32_1 = arith.constant 0 : i32
    return %c0_i32, %c0_i32_0 : i32, i32
  }
  func.func @transform_6(%arg0: i32) -> (i32, i32) {
    %c0_i32 = arith.constant 0 : i32
    %c0_i32_0 = arith.constant 0 : i32
    %c0_i32_1 = arith.constant 0 : i32
    return %c0_i32, %c0_i32_0 : i32, i32
  }
  func.func @transform_7(%arg0: i32) -> (i32, i32) {
    %c0_i32 = arith.constant 0 : i32
    %c0_i32_0 = arith.constant 0 : i32
    return %arg0, %c0_i32 : i32, i32
  }
}

module attributes {stable_mosaic.version = 11 : i64} {
  func.func @mlp_kernel(%arg0: i32, %arg1: memref<8x128xf32, #tpu.memory_space<vmem>>, %arg2: memref<128x128xf32, #tpu.memory_space<vmem>>, %arg3: memref<1x128xf32, #tpu.memory_space<vmem>>, %arg4: memref<128x128xf32, #tpu.memory_space<vmem>>, %arg5: memref<1x128xf32, #tpu.memory_space<vmem>>, %arg6: memref<128x128xf32, #tpu.memory_space<vmem>>, %arg7: memref<1x128xf32, #tpu.memory_space<vmem>>, %arg8: memref<8x128xf32, #tpu.memory_space<vmem>>) attributes {dimension_semantics = [#tpu.dimension_semantics<parallel>], iteration_bounds = array<i64: 1>, scalar_prefetch = 0 : i64, scratch_operands = 0 : i64, tpu.core_type = #tpu.core_type<tc>, window_params = [{transform_indices = @transform_0, window_bounds = array<i64: 8, 128>}, {pipeline_mode = #tpu.pipeline_mode<synchronous>, transform_indices = @transform_1, window_bounds = array<i64: 128, 128>}, {pipeline_mode = #tpu.pipeline_mode<synchronous>, transform_indices = @transform_2, window_bounds = array<i64: 1, 128>}, {pipeline_mode = #tpu.pipeline_mode<synchronous>, transform_indices = @transform_3, window_bounds = array<i64: 128, 128>}, {pipeline_mode = #tpu.pipeline_mode<synchronous>, transform_indices = @transform_4, window_bounds = array<i64: 1, 128>}, {pipeline_mode = #tpu.pipeline_mode<synchronous>, transform_indices = @transform_5, window_bounds = array<i64: 128, 128>}, {pipeline_mode = #tpu.pipeline_mode<synchronous>, transform_indices = @transform_6, window_bounds = array<i64: 1, 128>}, {transform_indices = @transform_7, window_bounds = array<i64: 8, 128>}]} {
    %c0 = arith.constant 0 : index
    %c0_0 = arith.constant 0 : index
    %0 = vector.load %arg1[%c0, %c0_0] : memref<8x128xf32, #tpu.memory_space<vmem>>, vector<8x128xf32>
    %c0_1 = arith.constant 0 : index
    %c0_2 = arith.constant 0 : index
    %1 = vector.load %arg2[%c0_1, %c0_2] : memref<128x128xf32, #tpu.memory_space<vmem>>, vector<128x128xf32>
    %cst = arith.constant dense<0.000000e+00> : vector<8x128xf32>
    %2 = tpu.matmul %0, %1, %cst {dimension_numbers = #tpu.dot_dimension_numbers<[1], [0], [0], [1], [0, 0, 1, 1], [], []>} : vector<8x128xf32>, vector<128x128xf32>, vector<8x128xf32> -> vector<8x128xf32>
    %c0_3 = arith.constant 0 : index
    %c0_4 = arith.constant 0 : index
    %3 = vector.load %arg3[%c0_3, %c0_4] : memref<1x128xf32, #tpu.memory_space<vmem>>, vector<1x128xf32>
    %4 = vector.broadcast %3 : vector<1x128xf32> to vector<8x128xf32>
    %5 = arith.addf %2, %4 : vector<8x128xf32>
    %cst_5 = arith.constant 0.000000e+00 : f32
    %6 = vector.broadcast %cst_5 : f32 to vector<8x128xf32>
    %7 = arith.cmpf oge, %5, %6 : vector<8x128xf32>
    %cst_6 = arith.constant 0.00999999977 : f32
    %8 = vector.broadcast %cst_6 : f32 to vector<8x128xf32>
    %9 = arith.mulf %8, %5 : vector<8x128xf32>
    %10 = arith.select %7, %5, %9 : vector<8x128xi1>, vector<8x128xf32>
    %c0_7 = arith.constant 0 : index
    %c0_8 = arith.constant 0 : index
    %11 = vector.load %arg4[%c0_7, %c0_8] : memref<128x128xf32, #tpu.memory_space<vmem>>, vector<128x128xf32>
    %cst_9 = arith.constant dense<0.000000e+00> : vector<8x128xf32>
    %12 = tpu.matmul %10, %11, %cst_9 {dimension_numbers = #tpu.dot_dimension_numbers<[1], [0], [0], [1], [0, 0, 1, 1], [], []>} : vector<8x128xf32>, vector<128x128xf32>, vector<8x128xf32> -> vector<8x128xf32>
    %c0_10 = arith.constant 0 : index
    %c0_11 = arith.constant 0 : index
    %13 = vector.load %arg5[%c0_10, %c0_11] : memref<1x128xf32, #tpu.memory_space<vmem>>, vector<1x128xf32>
    %14 = vector.broadcast %13 : vector<1x128xf32> to vector<8x128xf32>
    %15 = arith.addf %12, %14 : vector<8x128xf32>
    %cst_12 = arith.constant 0.000000e+00 : f32
    %16 = vector.broadcast %cst_12 : f32 to vector<8x128xf32>
    %17 = arith.cmpf oge, %15, %16 : vector<8x128xf32>
    %cst_13 = arith.constant 0.00999999977 : f32
    %18 = vector.broadcast %cst_13 : f32 to vector<8x128xf32>
    %19 = arith.mulf %18, %15 : vector<8x128xf32>
    %20 = arith.select %17, %15, %19 : vector<8x128xi1>, vector<8x128xf32>
    %c0_14 = arith.constant 0 : index
    %c0_15 = arith.constant 0 : index
    %21 = vector.load %arg6[%c0_14, %c0_15] : memref<128x128xf32, #tpu.memory_space<vmem>>, vector<128x128xf32>
    %cst_16 = arith.constant dense<0.000000e+00> : vector<8x128xf32>
    %22 = tpu.matmul %20, %21, %cst_16 {dimension_numbers = #tpu.dot_dimension_numbers<[1], [0], [0], [1], [0, 0, 1, 1], [], []>} : vector<8x128xf32>, vector<128x128xf32>, vector<8x128xf32> -> vector<8x128xf32>
    %c0_17 = arith.constant 0 : index
    %c0_18 = arith.constant 0 : index
    %23 = vector.load %arg7[%c0_17, %c0_18] : memref<1x128xf32, #tpu.memory_space<vmem>>, vector<1x128xf32>
    %24 = vector.broadcast %23 : vector<1x128xf32> to vector<8x128xf32>
    %25 = arith.addf %22, %24 : vector<8x128xf32>
    %c0_19 = arith.constant 0 : index
    %c0_20 = arith.constant 0 : index
    %26 = vector.load %arg8[%c0_19, %c0_20] : memref<8x128xf32, #tpu.memory_space<vmem>>, vector<8x128xf32>
    tpu.vector_store %arg8[%c0_19, %c0_20], %25 {strides = array<i32>} : memref<8x128xf32, #tpu.memory_space<vmem>>, vector<8x128xf32>,
    return
  }
  func.func @transform_0(%arg0: i32) -> (i32, i32) {
    %c0_i32 = arith.constant 0 : i32
    %c0_i32_0 = arith.constant 0 : i32
    return %arg0, %c0_i32 : i32, i32
  }
  func.func @transform_1(%arg0: i32) -> (i32, i32) {
    %c0_i32 = arith.constant 0 : i32
    %c0_i32_0 = arith.constant 0 : i32
    %c0_i32_1 = arith.constant 0 : i32
    return %c0_i32, %c0_i32_0 : i32, i32
  }
  func.func @transform_2(%arg0: i32) -> (i32, i32) {
    %c0_i32 = arith.constant 0 : i32
    %c0_i32_0 = arith.constant 0 : i32
    %c0_i32_1 = arith.constant 0 : i32
    return %c0_i32, %c0_i32_0 : i32, i32
  }
  func.func @transform_3(%arg0: i32) -> (i32, i32) {
    %c0_i32 = arith.constant 0 : i32
    %c0_i32_0 = arith.constant 0 : i32
    %c0_i32_1 = arith.constant 0 : i32
    return %c0_i32, %c0_i32_0 : i32, i32
  }
  func.func @transform_4(%arg0: i32) -> (i32, i32) {
    %c0_i32 = arith.constant 0 : i32
    %c0_i32_0 = arith.constant 0 : i32
    %c0_i32_1 = arith.constant 0 : i32
    return %c0_i32, %c0_i32_0 : i32, i32
  }
  func.func @transform_5(%arg0: i32) -> (i32, i32) {
    %c0_i32 = arith.constant 0 : i32
    %c0_i32_0 = arith.constant 0 : i32
    %c0_i32_1 = arith.constant 0 : i32
    return %c0_i32, %c0_i32_0 : i32, i32
  }
  func.func @transform_6(%arg0: i32) -> (i32, i32) {
    %c0_i32 = arith.constant 0 : i32
    %c0_i32_0 = arith.constant 0 : i32
    %c0_i32_1 = arith.constant 0 : i32
    return %c0_i32, %c0_i32_0 : i32, i32
  }
  func.func @transform_7(%arg0: i32) -> (i32, i32) {
    %c0_i32 = arith.constant 0 : i32
    %c0_i32_0 = arith.constant 0 : i32
    return %arg0, %c0_i32 : i32, i32
  }
}

</mosaic_0001>

<bundles_post_ra>
// kernel: tpu_custom_call.1
= control target key start
LH: loop header
LB: loop body
LE: loop exit
PB: predicated region body
PF: predicated region fallthrough
CT: control target
= control target key end

     0   :  { %12 = vsyncpa [#allocation3], 0  ;;  %s444_s0 = inlined_call_operand.hbm [shape: f32[8,128], index: 0, kind: input, shape index: {}]   ;;  %s445_s1 = inlined_call_operand.hbm [shape: f32[128,128], index: 1, kind: input, shape index: {}]   ;;  %s446_s2 = inlined_call_operand.vmem [shape: f32[1,128], index: 2, kind: input, shape index: {}]   ;;  %s447_s3 = inlined_call_operand.hbm [shape: f32[128,128], index: 3, kind: input, shape index: {}]   ;;  %s448_s4 = inlined_call_operand.vmem [shape: f32[1,128], index: 4, kind: input, shape index: {}]   ;;  %s449_s5 = inlined_call_operand.hbm [shape: f32[128,128], index: 5, kind: input, shape index: {}]   ;;  %s450_s6 = inlined_call_operand.vmem [shape: f32[1,128], index: 6, kind: input, shape index: {}]   ;;  %s451_s7 = inlined_call_operand.hbm [shape: f32[8,128], index: 7, kind: output, shape index: {}]  }
   0x1   :  { %13 = vsyncpa [#allocation6], 0 }
   0x2   :  { %14 = vsyncpa [#allocation9], 0  ;;  %s31_s26 = sshll.u32 %s445_s1, 4  ;;  %s32_s26 = int_to_ptr.hbm [resolvable:$true] %s31_s26 }
   0x3   :  { %15 = vsyncpa [#allocation4], 0  ;;  %s373_s27 = smov [#allocation5]   ;;  %s21_s8 = sshll.u32 %s444_s0, 4  ;;  %s22_s8 = int_to_ptr.hbm [resolvable:$true] %s21_s8 }
   0x4   :  { %s33_s28 = sshll.u32 %s373_s27, 4  ;;  %s374_s9 = smov 128   ;;  %s34_s28 = int_to_ptr.vmem [resolvable:$true] %s33_s28 }
   0x5   :  { %s375_s10 = smov 8   ;;  %s376_s11 = smov [#allocation2]  }
   0x6   :  { %39 = dma.hbm_to_vmem [thread:$0]  %s32_s26, 2048, %s34_s28, [#allocation6], %s374_s9, %s374_s9, %s375_s10  }
   0x7   :  { %s23_s12 = sshll.u32 %s376_s11, 4  ;;  %s46_s15 = sshll.u32 %s447_s3, 4  ;;  %s24_s12 = int_to_ptr.vmem [resolvable:$true] %s23_s12  ;;  %s47_s15 = int_to_ptr.hbm [resolvable:$true] %s46_s15 }
   0x8   :  { %26 = dma.hbm_to_vmem [thread:$0]  %s22_s8, 128, %s24_s12, [#allocation3]  }
   0x9   :  { %s61_s17 = sshll.u32 %s449_s5, 4  ;;  %s377_s18 = smov [#allocation7]   ;;  %s62_s17 = int_to_ptr.hbm [resolvable:$true] %s61_s17 }
   0xa   :  { %s48_s19 = sshll.u32 %s377_s18, 4  ;;  %s378_s0 = smov [#allocation8]   ;;  %s49_s19 = int_to_ptr.vmem [resolvable:$true] %s48_s19 }
   0xb   :  { %54 = dma.hbm_to_vmem [thread:$0]  %s47_s15, 2048, %s49_s19, [#allocation6], %s374_s9, %s374_s9, %s375_s10  }
   0xc   :  { %s63_s20 = sshll.u32 %s378_s0, 4  ;;  %s64_s20 = int_to_ptr.vmem [resolvable:$true] %s63_s20 }
   0xd   :  { %69 = dma.hbm_to_vmem [thread:$0]  %s62_s17, 2048, %s64_s20, [#allocation9], %s374_s9, %s374_s9, %s375_s10  }
   0xe   :  { %365 = dma.done.wait [#allocation3], 128  }
   0xf   :  { %366 = vsyncadd [#allocation3], 4294967168 }
  0x10   :  { %367 = dma.done.wait [#allocation6], 4096  }
  0x11   :  { %368 = vsyncadd [#allocation6], 4294963200 }
  0x12   :  { %369 = dma.done.wait [#allocation9], 2048  }
  0x13   :  { %370 = vsyncadd [#allocation9], 4294965248  ;;  %v104_v0 = vld [vmem:[#allocation5 + $0x78] sm:$0xff]  ;;  %v103_v1 = vld [vmem:[#allocation5 + $0x70] sm:$0xff]  ;;  %s379_s24 = smov [#allocation10]   ;;  %s223_s28 = sshll.u32 %s451_s7, 4  ;;  %s224_s28 = int_to_ptr.hbm [resolvable:$true] %s223_s28 }
  0x14   :  { %109 = vmatpush.msra.mxu0 %v104_v0  ;;  %v102_v2 = vld [vmem:[#allocation5 + $0x68] sm:$0xff]  ;;  %v101_v3 = vld [vmem:[#allocation5 + $0x60] sm:$0xff]  ;;  %v147_v4 = vld [vmem:[#allocation7 + $0x78] sm:$0xff]  ;;  %s221_s25 = sshll.u32 %s379_s24, 4  ;;  %s222_s25 = int_to_ptr.vmem [resolvable:$true] %s221_s25 }
  0x15   :  { %v100_v5 = vld [vmem:[#allocation5 + $0x58] sm:$0xff]  ;;  %152 = vmatpush.msra.mxu1 %v147_v4  ;;  %v146_v6 = vld [vmem:[#allocation7 + $0x70] sm:$0xff]  ;;  %v145_v7 = vld [vmem:[#allocation7 + $0x68] sm:$0xff] }
  0x16   :  { %110 = vmatpush.msra.mxu0 %v103_v1  ;;  %v99_v8 = vld [vmem:[#allocation5 + $0x50] sm:$0xff]  ;;  %v144_v9 = vld [vmem:[#allocation7 + $0x60] sm:$0xff]  ;;  %v98_v10 = vld [vmem:[#allocation5 + $0x48] sm:$0xff] }
  0x17   :  { %153 = vmatpush.msra.mxu1 %v146_v6  ;;  %v143_v11 = vld [vmem:[#allocation7 + $0x58] sm:$0xff]  ;;  %v97_v12 = vld [vmem:[#allocation5 + $0x40] sm:$0xff]  ;;  %v142_v13 = vld [vmem:[#allocation7 + $0x50] sm:$0xff] }
  0x18   :  { %111 = vmatpush.msra.mxu0 %v102_v2  ;;  %v96_v14 = vld [vmem:[#allocation5 + $0x38] sm:$0xff]  ;;  %v141_v15 = vld [vmem:[#allocation7 + $0x48] sm:$0xff]  ;;  %v95_v16 = vld [vmem:[#allocation5 + $0x30] sm:$0xff] }
  0x19   :  { %154 = vmatpush.msra.mxu1 %v145_v7  ;;  %v140_v17 = vld [vmem:[#allocation7 + $0x40] sm:$0xff]  ;;  %v94_v18 = vld [vmem:[#allocation5 + $0x28] sm:$0xff]  ;;  %v139_v19 = vld [vmem:[#allocation7 + $0x38] sm:$0xff] }
  0x1a   :  { %112 = vmatpush.msra.mxu0 %v101_v3  ;;  %v93_v20 = vld [vmem:[#allocation5 + $0x20] sm:$0xff]  ;;  %v138_v21 = vld [vmem:[#allocation7 + $0x30] sm:$0xff]  ;;  %v92_v22 = vld [vmem:[#allocation5 + $0x18] sm:$0xff] }
  0x1b   :  { %155 = vmatpush.msra.mxu1 %v144_v9  ;;  %v137_v23 = vld [vmem:[#allocation7 + $0x28] sm:$0xff]  ;;  %v91_v24 = vld [vmem:[#allocation5 + $0x10] sm:$0xff]  ;;  %v136_v25 = vld [vmem:[#allocation7 + $0x20] sm:$0xff] }
  0x1c   :  { %113 = vmatpush.msra.mxu0 %v100_v5  ;;  %v90_v26 = vld [vmem:[#allocation5 + $0x8] sm:$0xff]  ;;  %v135_v27 = vld [vmem:[#allocation7 + $0x18] sm:$0xff]  ;;  %v89_v28 = vld [vmem:[#allocation5] sm:$0xff] }
  0x1d   :  { %156 = vmatpush.msra.mxu1 %v143_v11  ;;  %v88_v29 = vld [vmem:[#allocation2] sm:$0xff]  ;;  %v134_v30 = vld [vmem:[#allocation7 + $0x10] sm:$0xff]  ;;  %v133_v31 = vld [vmem:[#allocation7 + $0x8] sm:$0xff] }
  0x1e   :  { %114 = vmatpush.msra.mxu0 %v99_v8  ;;  %v132_v32 = vld [vmem:[#allocation7] sm:$0xff]  ;;  %v190_v33 = vld [vmem:[#allocation8 + $0x78] sm:$0xff]  ;;  %v189_v34 = vld [vmem:[#allocation8 + $0x70] sm:$0xff] }
  0x1f   :  { %157 = vmatpush.msra.mxu1 %v142_v13  ;;  %195 = vmatpush.msra.mxu2 %v190_v33  ;;  %v188_v35 = vld [vmem:[#allocation8 + $0x68] sm:$0xff]  ;;  %v187_v36 = vld [vmem:[#allocation8 + $0x60] sm:$0xff]  ;;  %v186_v37 = vld [vmem:[#allocation8 + $0x58] sm:$0xff] }
  0x20   :  { %115 = vmatpush.msra.mxu0 %v98_v10  ;;  %v185_v38 = vld [vmem:[#allocation8 + $0x50] sm:$0xff]  ;;  %v184_v39 = vld [vmem:[#allocation8 + $0x48] sm:$0xff]  ;;  %v183_v40 = vld [vmem:[#allocation8 + $0x40] sm:$0xff] }
  0x21   :  { %158 = vmatpush.msra.mxu1 %v141_v15  ;;  %196 = vmatpush.msra.mxu2 %v189_v34  ;;  %v182_v41 = vld [vmem:[#allocation8 + $0x38] sm:$0xff]  ;;  %v181_v42 = vld [vmem:[#allocation8 + $0x30] sm:$0xff]  ;;  %v180_v43 = vld [vmem:[#allocation8 + $0x28] sm:$0xff] }
  0x22   :  { %116 = vmatpush.msra.mxu0 %v97_v12  ;;  %v179_v44 = vld [vmem:[#allocation8 + $0x20] sm:$0xff]  ;;  %v178_v45 = vld [vmem:[#allocation8 + $0x18] sm:$0xff]  ;;  %v177_v51 = vld [vmem:[#allocation8 + $0x10] sm:$0xff] }
  0x23   :  { %159 = vmatpush.msra.mxu1 %v140_v17  ;;  %197 = vmatpush.msra.mxu2 %v188_v35  ;;  %v242_v46 = vld [vmem:[%s446_s2] ss:$0 sm:$0xff]  ;;  %v176_v52 = vld [vmem:[#allocation8 + $0x8] sm:$0xff]  ;;  %v175_v53 = vld [vmem:[#allocation8] sm:$0xff] }
  0x24   :  { %117 = vmatpush.msra.mxu0 %v96_v14  ;;  %v243_v54 = vld [vmem:[%s448_s4] ss:$0 sm:$0xff] }
  0x25   :  { %160 = vmatpush.msra.mxu1 %v139_v19  ;;  %198 = vmatpush.msra.mxu2 %v187_v36  ;;  %v244_v59 = vld [vmem:[%s450_s6] ss:$0 sm:$0xff] }
  0x26   :  { %118 = vmatpush.msra.mxu0 %v95_v16 }
  0x27   :  { %161 = vmatpush.msra.mxu1 %v138_v21  ;;  %199 = vmatpush.msra.mxu2 %v186_v37 }
  0x28   :  { %119 = vmatpush.msra.mxu0 %v94_v18 }
  0x29   :  { %162 = vmatpush.msra.mxu1 %v137_v23  ;;  %200 = vmatpush.msra.mxu2 %v185_v38 }
  0x2a   :  { %120 = vmatpush.msra.mxu0 %v93_v20 }
  0x2b   :  { %163 = vmatpush.msra.mxu1 %v136_v25  ;;  %201 = vmatpush.msra.mxu2 %v184_v39 }
  0x2c   :  { %121 = vmatpush.msra.mxu0 %v92_v22 }
  0x2d   :  { %164 = vmatpush.msra.mxu1 %v135_v27  ;;  %202 = vmatpush.msra.mxu2 %v183_v40 }
  0x2e   :  { %122 = vmatpush.msra.mxu0 %v91_v24 }
  0x2f   :  { %165 = vmatpush.msra.mxu1 %v134_v30  ;;  %203 = vmatpush.msra.mxu2 %v182_v41 }
  0x30   :  { %123 = vmatpush.msra.mxu0 %v90_v26 }
  0x31   :  { %166 = vmatpush.msra.mxu1 %v133_v31  ;;  %204 = vmatpush.msra.mxu2 %v181_v42 }
  0x32   :  { %124 = vmatpush.msra.mxu0 %v89_v28 }
  0x33   :  { %125 = vmatmul.f32.vlgmr.msra.gmra.mxu0 %v88_v29  ;;  %167 = vmatpush.msra.mxu1 %v132_v32 }
  0x34   :  { %205 = vmatpush.msra.mxu2 %v180_v43 }
  0x36   :  { %206 = vmatpush.msra.mxu2 %v179_v44 }
  0x38   :  { %207 = vmatpush.msra.mxu2 %v178_v45 }
  0x3a   :  { %208 = vmatpush.msra.mxu2 %v177_v51 }
  0x3c   :  { %209 = vmatpush.msra.mxu2 %v176_v52 }
  0x3e   :  { %210 = vmatpush.msra.mxu2 %v175_v53 }
  0xb0   :  { %v126_v47 = vpop.f32.mrf.mxu0 }
  0xb1   :  { %v127_v48 = vadd.f32 %v242_v46, %v126_v47 }
  0xb3   :  { %vm129_vm0 = vcmp.ge.f32.partialorder %v127_v48, 0.0  ;;  %v130_v49 = vmul.f32 0.01, %v127_v48 }
  0xb5   :  { %v131_v50 = vsel %vm129_vm0, %v127_v48, %v130_v49 }
  0xb6   :  { %168 = vmatmul.f32.vlgmr.msra.gmra.mxu1 %v131_v50 }
 0x133   :  { %v169_v55 = vpop.f32.mrf.mxu1 }
 0x134   :  { %v170_v56 = vadd.f32 %v243_v54, %v169_v55 }
 0x136   :  { %vm172_vm1 = vcmp.ge.f32.partialorder %v170_v56, 0.0  ;;  %v173_v57 = vmul.f32 0.01, %v170_v56 }
 0x138   :  { %v174_v58 = vsel %vm172_vm1, %v170_v56, %v173_v57 }
 0x139   :  { %211 = vmatmul.f32.vlgmr.msra.gmra.mxu2 %v174_v58 }
 0x1bc   :  { %v212_v60 = vpop.f32.mrf.mxu2 }
 0x1bd   :  { %v213_v61 = vadd.f32 %v244_v59, %v212_v60 }
 0x1bf   :  { %215 = vst [vmem:[#allocation10] sm:$0xff] %v213_v61 }
 0x1c0   :  { %226 = dma.vmem_to_hbm [thread:$0]  %s222_s25, 128, %s224_s28, [#allocation4]  }
 0x1c1   :  { %371 = dma.done.wait [#allocation4], 128  }
 0x1c2   :  { %372 = vsyncadd [#allocation4], 4294967168 }
 0x1c3   :  { %231 = vsyncpa [#allocation3], 1 }
 0x1c4   :  { %232 = vsyncpa [#allocation6], 1 }
 0x1c5   :  { %233 = vsyncpa [#allocation9], 1 }
 0x1c6   :  { %234 = vsyncpa [#allocation4], 1 }

// kernel: tpu_custom_call.1
= control target key start
LH: loop header
LB: loop body
LE: loop exit
PB: predicated region body
PF: predicated region fallthrough
CT: control target
= control target key end

     0   :  { %12 = vsyncpa [#allocation3], 0  ;;  %s444_s0 = inlined_call_operand.hbm [shape: f32[8,128], index: 0, kind: input, shape index: {}]   ;;  %s445_s1 = inlined_call_operand.hbm [shape: f32[128,128], index: 1, kind: input, shape index: {}]   ;;  %s446_s2 = inlined_call_operand.vmem [shape: f32[1,128], index: 2, kind: input, shape index: {}]   ;;  %s447_s3 = inlined_call_operand.hbm [shape: f32[128,128], index: 3, kind: input, shape index: {}]   ;;  %s448_s4 = inlined_call_operand.vmem [shape: f32[1,128], index: 4, kind: input, shape index: {}]   ;;  %s449_s5 = inlined_call_operand.hbm [shape: f32[128,128], index: 5, kind: input, shape index: {}]   ;;  %s450_s6 = inlined_call_operand.vmem [shape: f32[1,128], index: 6, kind: input, shape index: {}]   ;;  %s451_s7 = inlined_call_operand.hbm [shape: f32[8,128], index: 7, kind: output, shape index: {}]  }
   0x1   :  { %13 = vsyncpa [#allocation6], 0 }
   0x2   :  { %14 = vsyncpa [#allocation9], 0  ;;  %s31_s26 = sshll.u32 %s445_s1, 4  ;;  %s32_s26 = int_to_ptr.hbm [resolvable:$true] %s31_s26 }
   0x3   :  { %15 = vsyncpa [#allocation4], 0  ;;  %s373_s27 = smov [#allocation5]   ;;  %s21_s8 = sshll.u32 %s444_s0, 4  ;;  %s22_s8 = int_to_ptr.hbm [resolvable:$true] %s21_s8 }
   0x4   :  { %s33_s28 = sshll.u32 %s373_s27, 4  ;;  %s374_s9 = smov 128   ;;  %s34_s28 = int_to_ptr.vmem [resolvable:$true] %s33_s28 }
   0x5   :  { %s375_s10 = smov 8   ;;  %s376_s11 = smov [#allocation2]  }
   0x6   :  { %39 = dma.hbm_to_vmem [thread:$0]  %s32_s26, 2048, %s34_s28, [#allocation6], %s374_s9, %s374_s9, %s375_s10  }
   0x7   :  { %s23_s12 = sshll.u32 %s376_s11, 4  ;;  %s46_s15 = sshll.u32 %s447_s3, 4  ;;  %s24_s12 = int_to_ptr.vmem [resolvable:$true] %s23_s12  ;;  %s47_s15 = int_to_ptr.hbm [resolvable:$true] %s46_s15 }
   0x8   :  { %26 = dma.hbm_to_vmem [thread:$0]  %s22_s8, 128, %s24_s12, [#allocation3]  }
   0x9   :  { %s61_s17 = sshll.u32 %s449_s5, 4  ;;  %s377_s18 = smov [#allocation7]   ;;  %s62_s17 = int_to_ptr.hbm [resolvable:$true] %s61_s17 }
   0xa   :  { %s48_s19 = sshll.u32 %s377_s18, 4  ;;  %s378_s0 = smov [#allocation8]   ;;  %s49_s19 = int_to_ptr.vmem [resolvable:$true] %s48_s19 }
   0xb   :  { %54 = dma.hbm_to_vmem [thread:$0]  %s47_s15, 2048, %s49_s19, [#allocation6], %s374_s9, %s374_s9, %s375_s10  }
   0xc   :  { %s63_s20 = sshll.u32 %s378_s0, 4  ;;  %s64_s20 = int_to_ptr.vmem [resolvable:$true] %s63_s20 }
   0xd   :  { %69 = dma.hbm_to_vmem [thread:$0]  %s62_s17, 2048, %s64_s20, [#allocation9], %s374_s9, %s374_s9, %s375_s10  }
   0xe   :  { %365 = dma.done.wait [#allocation3], 128  }
   0xf   :  { %366 = vsyncadd [#allocation3], 4294967168 }
  0x10   :  { %367 = dma.done.wait [#allocation6], 4096  }
  0x11   :  { %368 = vsyncadd [#allocation6], 4294963200 }
  0x12   :  { %369 = dma.done.wait [#allocation9], 2048  }
  0x13   :  { %370 = vsyncadd [#allocation9], 4294965248  ;;  %v104_v0 = vld [vmem:[#allocation5 + $0x78] sm:$0xff]  ;;  %v103_v1 = vld [vmem:[#allocation5 + $0x70] sm:$0xff]  ;;  %s379_s24 = smov [#allocation10]   ;;  %s223_s28 = sshll.u32 %s451_s7, 4  ;;  %s224_s28 = int_to_ptr.hbm [resolvable:$true] %s223_s28 }
  0x14   :  { %109 = vmatpush.msra.mxu0 %v104_v0  ;;  %v102_v2 = vld [vmem:[#allocation5 + $0x68] sm:$0xff]  ;;  %v101_v3 = vld [vmem:[#allocation5 + $0x60] sm:$0xff]  ;;  %v147_v4 = vld [vmem:[#allocation7 + $0x78] sm:$0xff]  ;;  %s221_s25 = sshll.u32 %s379_s24, 4  ;;  %s222_s25 = int_to_ptr.vmem [resolvable:$true] %s221_s25 }
  0x15   :  { %v100_v5 = vld [vmem:[#allocation5 + $0x58] sm:$0xff]  ;;  %152 = vmatpush.msra.mxu1 %v147_v4  ;;  %v146_v6 = vld [vmem:[#allocation7 + $0x70] sm:$0xff]  ;;  %v145_v7 = vld [vmem:[#allocation7 + $0x68] sm:$0xff] }
  0x16   :  { %110 = vmatpush.msra.mxu0 %v103_v1  ;;  %v99_v8 = vld [vmem:[#allocation5 + $0x50] sm:$0xff]  ;;  %v144_v9 = vld [vmem:[#allocation7 + $0x60] sm:$0xff]  ;;  %v98_v10 = vld [vmem:[#allocation5 + $0x48] sm:$0xff] }
  0x17   :  { %153 = vmatpush.msra.mxu1 %v146_v6  ;;  %v143_v11 = vld [vmem:[#allocation7 + $0x58] sm:$0xff]  ;;  %v97_v12 = vld [vmem:[#allocation5 + $0x40] sm:$0xff]  ;;  %v142_v13 = vld [vmem:[#allocation7 + $0x50] sm:$0xff] }
  0x18   :  { %111 = vmatpush.msra.mxu0 %v102_v2  ;;  %v96_v14 = vld [vmem:[#allocation5 + $0x38] sm:$0xff]  ;;  %v141_v15 = vld [vmem:[#allocation7 + $0x48] sm:$0xff]  ;;  %v95_v16 = vld [vmem:[#allocation5 + $0x30] sm:$0xff] }
  0x19   :  { %154 = vmatpush.msra.mxu1 %v145_v7  ;;  %v140_v17 = vld [vmem:[#allocation7 + $0x40] sm:$0xff]  ;;  %v94_v18 = vld [vmem:[#allocation5 + $0x28] sm:$0xff]  ;;  %v139_v19 = vld [vmem:[#allocation7 + $0x38] sm:$0xff] }
  0x1a   :  { %112 = vmatpush.msra.mxu0 %v101_v3  ;;  %v93_v20 = vld [vmem:[#allocation5 + $0x20] sm:$0xff]  ;;  %v138_v21 = vld [vmem:[#allocation7 + $0x30] sm:$0xff]  ;;  %v92_v22 = vld [vmem:[#allocation5 + $0x18] sm:$0xff] }
  0x1b   :  { %155 = vmatpush.msra.mxu1 %v144_v9  ;;  %v137_v23 = vld [vmem:[#allocation7 + $0x28] sm:$0xff]  ;;  %v91_v24 = vld [vmem:[#allocation5 + $0x10] sm:$0xff]  ;;  %v136_v25 = vld [vmem:[#allocation7 + $0x20] sm:$0xff] }
  0x1c   :  { %113 = vmatpush.msra.mxu0 %v100_v5  ;;  %v90_v26 = vld [vmem:[#allocation5 + $0x8] sm:$0xff]  ;;  %v135_v27 = vld [vmem:[#allocation7 + $0x18] sm:$0xff]  ;;  %v89_v28 = vld [vmem:[#allocation5] sm:$0xff] }
  0x1d   :  { %156 = vmatpush.msra.mxu1 %v143_v11  ;;  %v88_v29 = vld [vmem:[#allocation2] sm:$0xff]  ;;  %v134_v30 = vld [vmem:[#allocation7 + $0x10] sm:$0xff]  ;;  %v133_v31 = vld [vmem:[#allocation7 + $0x8] sm:$0xff] }
  0x1e   :  { %114 = vmatpush.msra.mxu0 %v99_v8  ;;  %v132_v32 = vld [vmem:[#allocation7] sm:$0xff]  ;;  %v190_v33 = vld [vmem:[#allocation8 + $0x78] sm:$0xff]  ;;  %v189_v34 = vld [vmem:[#allocation8 + $0x70] sm:$0xff] }
  0x1f   :  { %157 = vmatpush.msra.mxu1 %v142_v13  ;;  %195 = vmatpush.msra.mxu2 %v190_v33  ;;  %v188_v35 = vld [vmem:[#allocation8 + $0x68] sm:$0xff]  ;;  %v187_v36 = vld [vmem:[#allocation8 + $0x60] sm:$0xff]  ;;  %v186_v37 = vld [vmem:[#allocation8 + $0x58] sm:$0xff] }
  0x20   :  { %115 = vmatpush.msra.mxu0 %v98_v10  ;;  %v185_v38 = vld [vmem:[#allocation8 + $0x50] sm:$0xff]  ;;  %v184_v39 = vld [vmem:[#allocation8 + $0x48] sm:$0xff]  ;;  %v183_v40 = vld [vmem:[#allocation8 + $0x40] sm:$0xff] }
  0x21   :  { %158 = vmatpush.msra.mxu1 %v141_v15  ;;  %196 = vmatpush.msra.mxu2 %v189_v34  ;;  %v182_v41 = vld [vmem:[#allocation8 + $0x38] sm:$0xff]  ;;  %v181_v42 = vld [vmem:[#allocation8 + $0x30] sm:$0xff]  ;;  %v180_v43 = vld [vmem:[#allocation8 + $0x28] sm:$0xff] }
  0x22   :  { %116 = vmatpush.msra.mxu0 %v97_v12  ;;  %v179_v44 = vld [vmem:[#allocation8 + $0x20] sm:$0xff]  ;;  %v178_v45 = vld [vmem:[#allocation8 + $0x18] sm:$0xff]  ;;  %v177_v51 = vld [vmem:[#allocation8 + $0x10] sm:$0xff] }
  0x23   :  { %159 = vmatpush.msra.mxu1 %v140_v17  ;;  %197 = vmatpush.msra.mxu2 %v188_v35  ;;  %v242_v46 = vld [vmem:[%s446_s2] ss:$0 sm:$0xff]  ;;  %v176_v52 = vld [vmem:[#allocation8 + $0x8] sm:$0xff]  ;;  %v175_v53 = vld [vmem:[#allocation8] sm:$0xff] }
  0x24   :  { %117 = vmatpush.msra.mxu0 %v96_v14  ;;  %v243_v54 = vld [vmem:[%s448_s4] ss:$0 sm:$0xff] }
  0x25   :  { %160 = vmatpush.msra.mxu1 %v139_v19  ;;  %198 = vmatpush.msra.mxu2 %v187_v36  ;;  %v244_v59 = vld [vmem:[%s450_s6] ss:$0 sm:$0xff] }
  0x26   :  { %118 = vmatpush.msra.mxu0 %v95_v16 }
  0x27   :  { %161 = vmatpush.msra.mxu1 %v138_v21  ;;  %199 = vmatpush.msra.mxu2 %v186_v37 }
  0x28   :  { %119 = vmatpush.msra.mxu0 %v94_v18 }
  0x29   :  { %162 = vmatpush.msra.mxu1 %v137_v23  ;;  %200 = vmatpush.msra.mxu2 %v185_v38 }
  0x2a   :  { %120 = vmatpush.msra.mxu0 %v93_v20 }
  0x2b   :  { %163 = vmatpush.msra.mxu1 %v136_v25  ;;  %201 = vmatpush.msra.mxu2 %v184_v39 }
  0x2c   :  { %121 = vmatpush.msra.mxu0 %v92_v22 }
  0x2d   :  { %164 = vmatpush.msra.mxu1 %v135_v27  ;;  %202 = vmatpush.msra.mxu2 %v183_v40 }
  0x2e   :  { %122 = vmatpush.msra.mxu0 %v91_v24 }
  0x2f   :  { %165 = vmatpush.msra.mxu1 %v134_v30  ;;  %203 = vmatpush.msra.mxu2 %v182_v41 }
  0x30   :  { %123 = vmatpush.msra.mxu0 %v90_v26 }
  0x31   :  { %166 = vmatpush.msra.mxu1 %v133_v31  ;;  %204 = vmatpush.msra.mxu2 %v181_v42 }
  0x32   :  { %124 = vmatpush.msra.mxu0 %v89_v28 }
  0x33   :  { %125 = vmatmul.f32.vlgmr.msra.gmra.mxu0 %v88_v29  ;;  %167 = vmatpush.msra.mxu1 %v132_v32 }
  0x34   :  { %205 = vmatpush.msra.mxu2 %v180_v43 }
  0x36   :  { %206 = vmatpush.msra.mxu2 %v179_v44 }
  0x38   :  { %207 = vmatpush.msra.mxu2 %v178_v45 }
  0x3a   :  { %208 = vmatpush.msra.mxu2 %v177_v51 }
  0x3c   :  { %209 = vmatpush.msra.mxu2 %v176_v52 }
  0x3e   :  { %210 = vmatpush.msra.mxu2 %v175_v53 }
  0xb0   :  { %v126_v47 = vpop.f32.mrf.mxu0 }
  0xb1   :  { %v127_v48 = vadd.f32 %v242_v46, %v126_v47 }
  0xb3   :  { %vm129_vm0 = vcmp.ge.f32.partialorder %v127_v48, 0.0  ;;  %v130_v49 = vmul.f32 0.01, %v127_v48 }
  0xb5   :  { %v131_v50 = vsel %vm129_vm0, %v127_v48, %v130_v49 }
  0xb6   :  { %168 = vmatmul.f32.vlgmr.msra.gmra.mxu1 %v131_v50 }
 0x133   :  { %v169_v55 = vpop.f32.mrf.mxu1 }
 0x134   :  { %v170_v56 = vadd.f32 %v243_v54, %v169_v55 }
 0x136   :  { %vm172_vm1 = vcmp.ge.f32.partialorder %v170_v56, 0.0  ;;  %v173_v57 = vmul.f32 0.01, %v170_v56 }
 0x138   :  { %v174_v58 = vsel %vm172_vm1, %v170_v56, %v173_v57 }
 0x139   :  { %211 = vmatmul.f32.vlgmr.msra.gmra.mxu2 %v174_v58 }
 0x1bc   :  { %v212_v60 = vpop.f32.mrf.mxu2 }
 0x1bd   :  { %v213_v61 = vadd.f32 %v244_v59, %v212_v60 }
 0x1bf   :  { %215 = vst [vmem:[#allocation10] sm:$0xff] %v213_v61 }
 0x1c0   :  { %226 = dma.vmem_to_hbm [thread:$0]  %s222_s25, 128, %s224_s28, [#allocation4]  }
 0x1c1   :  { %371 = dma.done.wait [#allocation4], 128  }
 0x1c2   :  { %372 = vsyncadd [#allocation4], 4294967168 }
 0x1c3   :  { %231 = vsyncpa [#allocation3], 1 }
 0x1c4   :  { %232 = vsyncpa [#allocation6], 1 }
 0x1c5   :  { %233 = vsyncpa [#allocation9], 1 }
 0x1c6   :  { %234 = vsyncpa [#allocation4], 1 }

</bundles_post_ra>
